<compile_context>
chip_gen: v7x
topology: tpu7x:2x2x1
jax: 0.10.0
libtpu: 0.0.40
codegen_flags: <defaults>
</compile_context>

<pallas_src>
import jax
import jax.numpy as jnp
from jax.experimental import pallas as pl
from jax.experimental.pallas import tpu as pltpu

LANES = 128          # lane width of a vreg
ROW_ALIGN = 16       # sublane alignment that is safe for both f32 (8) and bf16 (16)
MAX_TILE_ROWS = 1024  # (1024,128) f32 = 512 KiB per input per grid step


def _ceil_to(x, m):
    return -(-x // m) * m


def _make_kernel(tile_rows):
    groups = tile_rows // 8  # number of (8,128) vreg slabs per tile

    def kernel(yhat_ref, y_ref, out_ref, err_acc, cnt_acc):
        t = pl.program_id(1)

        @pl.when(t == 0)
        def _init():
            err_acc[...] = jnp.zeros_like(err_acc)
            cnt_acc[...] = jnp.zeros_like(cnt_acc)

        yhat = yhat_ref[...].astype(jnp.float32)
        y = y_ref[...].astype(jnp.float32)

        diff = yhat - y
        err_tile = jnp.log(diff * diff + 1.0)                   # EUP log, VPU fma
        cnt_tile = (yhat * y > 0.0).astype(jnp.float32)

        # Fold the (tile_rows,128) tile into the (8,128) accumulator: the reshape is a
        # layout-preserving split of the sublane dim, so the sum over axis 0 is just
        # elementwise vreg adds (no XLU work in the steady state).
        err_acc[...] += err_tile.reshape(groups, 8, LANES).sum(axis=0)
        cnt_acc[...] += cnt_tile.reshape(groups, 8, LANES).sum(axis=0)

        @pl.when(t == pl.num_programs(1) - 1)
        def _finalize():
            out_ref[0, 0] = jnp.sum(err_acc[...])   # errorSq partial for this core
            out_ref[0, 1] = jnp.sum(cnt_acc[...])   # numSignCor partial for this core

    return kernel


def my_loss(yhat, y):
    """Pallas implementation of myLoss.forward for 1-D inputs (f32 or bf16)."""
    assert yhat.ndim == 1 and yhat.shape == y.shape
    n = yhat.shape[0]

    # Keep bf16 streaming as bf16 (upcast happens inside the kernel); everything else
    # is promoted to f32 in the wrapper.
    dt = jnp.promote_types(yhat.dtype, y.dtype)
    if not (dt == jnp.float32 or dt == jnp.bfloat16):
        dt = jnp.dtype(jnp.float32)
    yhat = yhat.astype(dt)
    y = y.astype(dt)

    # Lane-dense layout: rows of 128, rounded up so every block is (8/16,128)-legal.
    rows = _ceil_to(-(-n // LANES), ROW_ALIGN)
    tile_rows = min(rows, MAX_TILE_ROWS)
    num_tiles = -(-rows // tile_rows)
    # 2-way core split (v7x megacore) only when there is enough work per core.
    num_cores = 2 if num_tiles >= 4 else 1
    tiles_per_core = -(-num_tiles // num_cores)
    rows_padded = num_cores * tiles_per_core * tile_rows
    padded_len = rows_padded * LANES

    if padded_len != n:
        # Zero padding is loss-neutral (log(0+1)=0, 0>0 is False); true N used below.
        yhat = jnp.pad(yhat, (0, padded_len - n))
        y = jnp.pad(y, (0, padded_len - n))
    yhat2d = yhat.reshape(rows_padded, LANES)
    y2d = y.reshape(rows_padded, LANES)

    in_map = lambda c, t: (c * tiles_per_core + t, 0)
    partials = pl.pallas_call(
        _make_kernel(tile_rows),
        out_shape=jax.ShapeDtypeStruct((num_cores, 2), jnp.float32),
        grid_spec=pltpu.PrefetchScalarGridSpec(
            num_scalar_prefetch=0,
            grid=(num_cores, tiles_per_core),
            in_specs=[
                pl.BlockSpec((tile_rows, LANES), in_map),
                pl.BlockSpec((tile_rows, LANES), in_map),
            ],
            out_specs=pl.BlockSpec((1, 2), lambda c, t: (c, 0),
                                   memory_space=pltpu.SMEM),
            scratch_shapes=[
                pltpu.VMEM((8, LANES), jnp.float32),
                pltpu.VMEM((8, LANES), jnp.float32),
            ],
        ),
        compiler_params=pltpu.CompilerParams(
            dimension_semantics=("parallel", "arbitrary"),
        ),
    )(yhat2d, y2d)

    # Tiny epilogue: combine per-core partials, then sigmoid / scale (true N).
    error_sq = jnp.sum(partials[:, 0])
    sign_cor = jnp.sum(partials[:, 1])
    n_f = jnp.float32(n)
    sign_inc = n_f - sign_cor
    # NOTE: sign_cor == 0 yields inf/NaN exactly like the PyTorch module.
    factor = jax.nn.sigmoid(sign_inc / sign_cor - 1.3)
    return error_sq * factor / n_f


def my_loss_ref(yhat, y):
    """Pure-JAX reference (mirrors the PyTorch forward)."""
    yhat = yhat.astype(jnp.float32)
    y = y.astype(jnp.float32)
    error_sq = jnp.sum(jnp.log(jnp.square(yhat - y) + 1.0))
    n = jnp.float32(y.shape[0])
    sign_cor = jnp.sum((yhat * y > 0.0).astype(jnp.float32))
    sign_inc = n - sign_cor
    factor = jax.nn.sigmoid(sign_inc / sign_cor - 1.3)
    return error_sq * factor / n


if __name__ == "__main__":
    key = jax.random.PRNGKey(0)

    # TODO(synk): the `assert not math.isnan(res)` of the PyTorch module cannot run on
    # a traced value; it is checked here on the concrete results instead.
    checks = [
        (256, jnp.float32),      # original tiny case: single (16,128) tile
        (300, jnp.float32),      # non-multiple-of-128 length -> zero padding path
        (300_000, jnp.float32),  # multi-tile pipelined reduction, grid = (1, 3)
        (520_000, jnp.bfloat16), # bf16 streaming + 2-way core split, grid = (2, 2)
    ]
    for idx, (n, dt) in enumerate(checks):
        k1, k2 = jax.random.split(jax.random.fold_in(key, idx))
        yhat = jax.random.normal(k1, (n,), dtype=jnp.float32).astype(dt)
        y = jax.random.normal(k2, (n,), dtype=jnp.float32).astype(dt)

        res = jax.block_until_ready(my_loss(yhat, y))
        ref = jax.block_until_ready(my_loss_ref(yhat, y))

        assert not bool(jnp.isnan(res)), ("result is NaN", n, str(dt))
        assert bool(jnp.allclose(res, ref, rtol=1e-4, atol=1e-6)), (n, str(dt), res, ref)

    print("KERNEL_OK")
</pallas_src>

<mosaic_0001>
module attributes {stable_mosaic.version = 11 : i64} {
  func.func @kernel(%arg0: i32, %arg1: i32, %arg2: memref<16x128xf32, #tpu.memory_space<vmem>>, %arg3: memref<16x128xf32, #tpu.memory_space<vmem>>, %arg4: memref<1x2xf32, #tpu.memory_space<smem>>, %arg5: memref<8x128xf32, #tpu.memory_space<vmem>>, %arg6: memref<8x128xf32, #tpu.memory_space<vmem>>) attributes {dimension_semantics = [#tpu.dimension_semantics<parallel>, #tpu.dimension_semantics<arbitrary>], iteration_bounds = array<i64: 1, 1>, scalar_prefetch = 0 : i64, scratch_operands = 2 : i64, tpu.core_type = #tpu.core_type<tc>, window_params = [{transform_indices = @transform_0, window_bounds = array<i64: 16, 128>}, {transform_indices = @transform_1, window_bounds = array<i64: 16, 128>}, {transform_indices = @transform_2, window_bounds = array<i64: 1, 2>}]} {
    %c0_i32 = arith.constant 0 : i32
    %0 = arith.cmpi eq, %arg1, %c0_i32 : i32
    %1 = arith.extui %0 : i1 to i32
    %c0_i32_0 = arith.constant 0 : i32
    %2 = arith.cmpi ne, %1, %c0_i32_0 : i32
    scf.if %2 {
      %cst_17 = arith.constant 0.000000e+00 : f32
      %28 = vector.broadcast %cst_17 : f32 to vector<8x128xf32>
      %c0_18 = arith.constant 0 : index
      %c0_19 = arith.constant 0 : index
      %29 = vector.load %arg5[%c0_18, %c0_19] : memref<8x128xf32, #tpu.memory_space<vmem>>, vector<8x128xf32>
      tpu.vector_store %arg5[%c0_18, %c0_19], %28 {strides = array<i32>} : memref<8x128xf32, #tpu.memory_space<vmem>>, vector<8x128xf32>,
      %cst_20 = arith.constant 0.000000e+00 : f32
      %30 = vector.broadcast %cst_20 : f32 to vector<8x128xf32>
      %c0_21 = arith.constant 0 : index
      %c0_22 = arith.constant 0 : index
      %31 = vector.load %arg6[%c0_21, %c0_22] : memref<8x128xf32, #tpu.memory_space<vmem>>, vector<8x128xf32>
      tpu.vector_store %arg6[%c0_21, %c0_22], %30 {strides = array<i32>} : memref<8x128xf32, #tpu.memory_space<vmem>>, vector<8x128xf32>,
    } else {
    }
    %c0 = arith.constant 0 : index
    %c0_1 = arith.constant 0 : index
    %3 = vector.load %arg2[%c0, %c0_1] : memref<16x128xf32, #tpu.memory_space<vmem>>, vector<16x128xf32>
    %c0_2 = arith.constant 0 : index
    %c0_3 = arith.constant 0 : index
    %4 = vector.load %arg3[%c0_2, %c0_3] : memref<16x128xf32, #tpu.memory_space<vmem>>, vector<16x128xf32>
    %5 = arith.subf %3, %4 : vector<16x128xf32>
    %6 = arith.mulf %5, %5 : vector<16x128xf32>
    %cst = arith.constant 1.000000e+00 : f32
    %7 = vector.broadcast %cst : f32 to vector<16x128xf32>
    %8 = arith.addf %6, %7 : vector<16x128xf32>
    %9 = math.log %8 : vector<16x128xf32>
    %10 = arith.mulf %3, %4 : vector<16x128xf32>
    %cst_4 = arith.constant 0.000000e+00 : f32
    %11 = vector.broadcast %cst_4 : f32 to vector<16x128xf32>
    %12 = arith.cmpf ogt, %10, %11 : vector<16x128xf32>
    %13 = arith.extui %12 : vector<16x128xi1> to vector<16x128xi32>
    %14 = arith.sitofp %13 : vector<16x128xi32> to vector<16x128xf32>
    %c0_5 = arith.constant 0 : index
    %c0_6 = arith.constant 0 : index
    %15 = vector.load %arg5[%c0_5, %c0_6] : memref<8x128xf32, #tpu.memory_space<vmem>>, vector<8x128xf32>
    %16 = vector.shape_cast %9 : vector<16x128xf32> to vector<2x8x128xf32>
    %cst_7 = arith.constant dense<0.000000e+00> : vector<8x128xf32>
    %17 = vector.multi_reduction <add>, %16, %cst_7 [0] : vector<2x8x128xf32> to vector<8x128xf32>
    %18 = arith.addf %15, %17 : vector<8x128xf32>
    %c0_8 = arith.constant 0 : index
    %c0_9 = arith.constant 0 : index
    %19 = vector.load %arg5[%c0_8, %c0_9] : memref<8x128xf32, #tpu.memory_space<vmem>>, vector<8x128xf32>
    tpu.vector_store %arg5[%c0_8, %c0_9], %18 {strides = array<i32>} : memref<8x128xf32, #tpu.memory_space<vmem>>, vector<8x128xf32>,
    %c0_10 = arith.constant 0 : index
    %c0_11 = arith.constant 0 : index
    %20 = vector.load %arg6[%c0_10, %c0_11] : memref<8x128xf32, #tpu.memory_space<vmem>>, vector<8x128xf32>
    %21 = vector.shape_cast %14 : vector<16x128xf32> to vector<2x8x128xf32>
    %cst_12 = arith.constant dense<0.000000e+00> : vector<8x128xf32>
    %22 = vector.multi_reduction <add>, %21, %cst_12 [0] : vector<2x8x128xf32> to vector<8x128xf32>
    %23 = arith.addf %20, %22 : vector<8x128xf32>
    %c0_13 = arith.constant 0 : index
    %c0_14 = arith.constant 0 : index
    %24 = vector.load %arg6[%c0_13, %c0_14] : memref<8x128xf32, #tpu.memory_space<vmem>>, vector<8x128xf32>
    tpu.vector_store %arg6[%c0_13, %c0_14], %23 {strides = array<i32>} : memref<8x128xf32, #tpu.memory_space<vmem>>, vector<8x128xf32>,
    %c0_i32_15 = arith.constant 0 : i32
    %25 = arith.cmpi eq, %arg1, %c0_i32_15 : i32
    %26 = arith.extui %25 : i1 to i32
    %c0_i32_16 = arith.constant 0 : i32
    %27 = arith.cmpi ne, %26, %c0_i32_16 : i32
    scf.if %27 {
      %c0_17 = arith.constant 0 : index
      %c0_18 = arith.constant 0 : index
      %28 = vector.load %arg5[%c0_17, %c0_18] : memref<8x128xf32, #tpu.memory_space<vmem>>, vector<8x128xf32>
      %29 = vector.shape_cast %28 : vector<8x128xf32> to vector<1x8x128xf32>
      %cst_19 = arith.constant dense<0.000000e+00> : vector<1xf32>
      %30 = vector.multi_reduction <add>, %29, %cst_19 [1, 2] : vector<1x8x128xf32> to vector<1xf32>
      %31 = vector.shape_cast %30 : vector<1xf32> to vector<1x1x1xf32>
      %32 = vector.extract %31[0, 0, 0] : f32 from vector<1x1x1xf32>
      %c0_20 = arith.constant 0 : index
      %c0_21 = arith.constant 0 : index
      %33 = memref.load %arg4[%c0_20, %c0_21] : memref<1x2xf32, #tpu.memory_space<smem>>
      memref.store %32, %arg4[%c0_20, %c0_21] : memref<1x2xf32, #tpu.memory_space<smem>>
      %c0_22 = arith.constant 0 : index
      %c0_23 = arith.constant 0 : index
      %34 = vector.load %arg6[%c0_22, %c0_23] : memref<8x128xf32, #tpu.memory_space<vmem>>, vector<8x128xf32>
      %35 = vector.shape_cast %34 : vector<8x128xf32> to vector<1x8x128xf32>
      %cst_24 = arith.constant dense<0.000000e+00> : vector<1xf32>
      %36 = vector.multi_reduction <add>, %35, %cst_24 [1, 2] : vector<1x8x128xf32> to vector<1xf32>
      %37 = vector.shape_cast %36 : vector<1xf32> to vector<1x1x1xf32>
      %38 = vector.extract %37[0, 0, 0] : f32 from vector<1x1x1xf32>
      %c0_25 = arith.constant 0 : index
      %c1 = arith.constant 1 : index
      %39 = memref.load %arg4[%c0_25, %c1] : memref<1x2xf32, #tpu.memory_space<smem>>
      memref.store %38, %arg4[%c0_25, %c1] : memref<1x2xf32, #tpu.memory_space<smem>>
    } else {
    }
    return
  }
  func.func @transform_0(%arg0: i32, %arg1: i32) -> (i32, i32) {
    %c1_i32 = arith.constant 1 : i32
    %0 = arith.muli %arg0, %c1_i32 : i32
    %1 = arith.addi %0, %arg1 : i32
    %c0_i32 = arith.constant 0 : i32
    %c0_i32_0 = arith.constant 0 : i32
    return %1, %c0_i32 : i32, i32
  }
  func.func @transform_1(%arg0: i32, %arg1: i32) -> (i32, i32) {
    %c1_i32 = arith.constant 1 : i32
    %0 = arith.muli %arg0, %c1_i32 : i32
    %1 = arith.addi %0, %arg1 : i32
    %c0_i32 = arith.constant 0 : i32
    %c0_i32_0 = arith.constant 0 : i32
    return %1, %c0_i32 : i32, i32
  }
  func.func @transform_2(%arg0: i32, %arg1: i32) -> (i32, i32) {
    %c0_i32 = arith.constant 0 : i32
    %c0_i32_0 = arith.constant 0 : i32
    return %arg0, %c0_i32 : i32, i32
  }
}

</mosaic_0001>

<bundles_post_ra>
// kernel: tpu_custom_call.1
= control target key start
LH: loop header
LB: loop body
LE: loop exit
PB: predicated region body
PF: predicated region fallthrough
CT: control target
= control target key end

     0   :  { %7 = vsyncpa [#allocation5], 0  ;;  %s263_s0 = inlined_call_operand.hbm [shape: f32[16,128], index: 0, kind: input, shape index: {}]   ;;  %s264_s1 = inlined_call_operand.hbm [shape: f32[16,128], index: 1, kind: input, shape index: {}]   ;;  %s265_s2 = inlined_call_operand.hbm [shape: f32[1,2], index: 2, kind: output, shape index: {}]  }
   0x1   :  { %8 = vsyncpa [#allocation8], 0 }
   0x2   :  { %9 = vsyncpa [#allocation6], 0  ;;  %s206_s9 = smov [#allocation4]   ;;  %s146_s13 = scalar_lea.hbm %s263_s0, 256 }
   0x3   :  { %s19_s10 = sshll.u32 %s206_s9, 4  ;;  %p147_p0 = scmp.ne.s32.totalorder %s263_s0, %s146_s13  ;;  %s20_s10 = int_to_ptr.vmem [resolvable:$true] %s19_s10 }
   0x4   :  { %p150_p1 = scmp.lt.u32.totalorder %s146_s13, %s263_s0 }
   0x6   :  { %p152_p2 = pnand %p150_p1, %p147_p0 }
   0x8   :  { %155 = shalt.err (!%p152_p2)
}
   0x9   :  { %s156_s18 = scalar_lea.vmem %s20_s10, 256  ;;  %p161_p4 = scmp.lt.s32.totalorder %s20_s10, %s20_s10 }
   0xa   :  { %p157_p3 = scmp.ne.s32.totalorder %s20_s10, %s156_s18  ;;  %p162_p5 = scmp.lt.s32.totalorder %s156_s18, %s156_s18 }
   0xc   :  { %p163_p6 = por %p162_p5, %p161_p4 }
   0xe   :  { %p164_p7 = pnand %p163_p6, %p157_p3 }
  0x10   :  { %167 = shalt.err (!%p164_p7)
}
  0x11   :  { %s207_s19 = smov 128   ;;  %s208_s20 = smov 8  }
  0x12   :  { %25 = dma.hbm_to_vmem [thread:$0]  %s263_s0, 256, %s20_s10, [#allocation5], %s207_s19, %s207_s19, %s208_s20  }
  0x13   :  { %s209_s23 = smov [#allocation7]   ;;  %s168_s27 = scalar_lea.hbm %s264_s1, 256 }
  0x14   :  { %s35_s24 = sshll.u32 %s209_s23, 4  ;;  %p169_p8 = scmp.ne.s32.totalorder %s264_s1, %s168_s27  ;;  %s36_s24 = int_to_ptr.vmem [resolvable:$true] %s35_s24 }
  0x15   :  { %p172_p9 = scmp.lt.u32.totalorder %s168_s27, %s264_s1 }
  0x17   :  { %p174_p10 = pnand %p172_p9, %p169_p8 }
  0x19   :  { %177 = shalt.err (!%p174_p10)
}
  0x1a   :  { %s178_s4 = scalar_lea.vmem %s36_s24, 256  ;;  %p183_p12 = scmp.lt.s32.totalorder %s36_s24, %s36_s24 }
  0x1b   :  { %p179_p11 = scmp.ne.s32.totalorder %s36_s24, %s178_s4  ;;  %p184_p13 = scmp.lt.s32.totalorder %s178_s4, %s178_s4 }
  0x1d   :  { %p185_p0 = por %p184_p13, %p183_p12 }
  0x1f   :  { %p186_p1 = pnand %p185_p0, %p179_p11 }
  0x21   :  { %189 = shalt.err (!%p186_p1)
}
  0x22   :  { %41 = dma.hbm_to_vmem [thread:$0]  %s264_s1, 256, %s36_s24, [#allocation8], %s207_s19, %s207_s19, %s208_s20  }
  0x23   :  { %200 = dma.done.wait [#allocation5], 256  }
  0x24   :  { %201 = vsyncadd [#allocation5], 4294967040 }
  0x25   :  { %202 = dma.done.wait [#allocation8], 256  }
  0x26   :  { %203 = vsyncadd [#allocation8], 4294967040  ;;  %v58_v0 = vld [vmem:[#allocation4] sm:$0xff]  ;;  %v59_v1 = vld [vmem:[#allocation4 + $0x8] sm:$0xff]  ;;  %v210_v16 = vmov 0.0   ;;  %s190_s9 = scalar_lea.hbm %s265_s2, 16 }
  0x27   :  { %v60_v2 = vld [vmem:[#allocation7] sm:$0xff]  ;;  %v61_v3 = vld [vmem:[#allocation7 + $0x8] sm:$0xff]  ;;  %p191_p2 = scmp.ne.s32.totalorder %s265_s2, %s190_s9  ;;  %p194_p3 = scmp.lt.u32.totalorder %s190_s9, %s265_s2 }
  0x28   :  { %v62_v4 = vsub.f32 %v58_v0, %v60_v2  ;;  %v63_v5 = vsub.f32 %v59_v1, %v61_v3  ;;  %v72_v10 = vmul.f32 %v60_v2, %v58_v0  ;;  %v73_v11 = vmul.f32 %v61_v3, %v59_v1 }
  0x29   :  { %p196_p4 = pnand %p194_p3, %p191_p2 }
  0x2a   :  { %v64_v6 = vmul.f32 %v62_v4, %v62_v4  ;;  %v65_v7 = vmul.f32 %v63_v5, %v63_v5  ;;  %vm74_vm0 = vcmp.gt.f32.partialorder %v72_v10, 0.0  ;;  %vm75_vm1 = vcmp.gt.f32.partialorder %v73_v11, 0.0 }
  0x2b   :  { %v130_v17 = vsel %vm74_vm0, 1.0, %v210_v16  ;;  %v131_v18 = vsel %vm75_vm1, 1.0, %v210_v16 }
  0x2c   :  { %v66_v8 = vadd.f32 1.0, %v64_v6  ;;  %v67_v9 = vadd.f32 1.0, %v65_v7  ;;  %v85_v20 = vadd.f32 %v131_v18, %v130_v17 }
  0x2e   :  { %142 = vlog2.f32 %v66_v8 }
  0x2f   :  { %144 = vlog2.f32 %v67_v9 }
  0x38   :  { %v143_v12 = vpop.eup %142 }
  0x39   :  { %v145_v13 = vpop.eup %144  ;;  %v69_v14 = vmul.f32 0.6931472, %v143_v12 }
  0x3a   :  { %v71_v15 = vmul.f32 0.6931472, %v145_v13 }
  0x3c   :  { %v81_v19 = vadd.f32 %v71_v15, %v69_v14 }
  0x3e   :  { %92 = vadd.xlane.f32.xlu0 %v81_v19 }
  0x42   :  { %104 = vadd.xlane.f32.xlu0 %v85_v20 }
  0xcb   :  { %v93_v21 = vpop.xlane.xlu0 %92 }
  0xcc   :  { %v94_v22 = vrot.slane %v93_v21, 4 }
  0xce   :  { %v95_v23 = vadd.f32 %v94_v22, %v93_v21 }
  0xcf   :  { %v105_v24 = vpop.xlane.xlu0 %104 }
  0xd0   :  { %v96_v25 = vrot.slane %v95_v23, 2  ;;  %v106_v26 = vrot.slane %v105_v24, 4 }
  0xd2   :  { %v107_v27 = vadd.f32 %v106_v26, %v105_v24  ;;  %v97_v28 = vadd.f32 %v96_v25, %v95_v23 }
  0xd4   :  { %v108_v29 = vrot.slane %v107_v27, 2  ;;  %v98_v30 = vrot.slane %v97_v28, 1 }
  0xd6   :  { %v109_v31 = vadd.f32 %v108_v29, %v107_v27  ;;  %v99_v32 = vadd.f32 %v98_v30, %v97_v28 }
  0xd8   :  { %132 = vpush %v99_v32  ;;  %v110_v33 = vrot.slane %v109_v31, 1 }
  0xda   :  { %v111_v34 = vadd.f32 %v110_v33, %v109_v31 }
  0xdc   :  { %134 = vpush %v111_v34 }
 0x109   :  { %s133_s1 = spop %132 }
 0x10a   :  { %102 = sst [smem:[#allocation9]] %s133_s1 }
 0x10d   :  { %s135_s6 = spop %134 }
 0x10e   :  { %114 = sst [smem:[#allocation9 + $0x1]] %s135_s6 }
 0x10f   :  { %199 = shalt.err (!%p196_p4)
}
 0x110   :  { %s211_s14 = smov [#allocation9]  }
 0x111   :  { %122 = dma.smem_to_hbm %s211_s14, 16, %s265_s2, [#allocation6]  }
 0x112   :  { %204 = dma.done.wait [#allocation6], 16  }
 0x113   :  { %205 = vsyncadd [#allocation6], 4294967280 }
 0x114   :  { %126 = sfence }
 0x115   :  { %127 = vsyncpa [#allocation5], 1 }
 0x116   :  { %128 = vsyncpa [#allocation8], 1 }
 0x117   :  { %129 = vsyncpa [#allocation6], 1 }

</bundles_post_ra>
